<compile_context>
chip_gen: v7x
topology: tpu7x:2x2x1
jax: 0.10.0
libtpu: 0.0.40
codegen_flags: <defaults>
</compile_context>

<pallas_src>
import functools
import math
from types import SimpleNamespace

import jax
import jax.numpy as jnp
from jax import lax
from jax.experimental import pallas as pl
from jax.experimental.pallas import tpu as pltpu


# ----------------------------------------------------------------------------
# Pallas kernel: per grid step handles TB batches (rows pre-flattened to TB*N).
#   kq    = x @ Wx + f @ Wf + b         (split fused projection, f32 accum)
#   W     = K Q^T (batched, bf16 operands, f32 accum)
#   attn  = W with diagonal zeroed
#   score = rowsum(attn)                (same masked matrix -> consistent)
# ----------------------------------------------------------------------------
def _sva_kernel(*refs, d, n, has_features, qk_bf16):
    if has_features:
        x_ref, f_ref, wx_ref, wf_ref, b_ref, score_ref, attn_ref = refs
    else:
        x_ref, wx_ref, b_ref, score_ref, attn_ref = refs
        f_ref = wf_ref = None

    tbn = x_ref.shape[0]
    tb = tbn // n

    # Split fused projection (one wide MXU matmul + one tiny one), f32 accum.
    kq = jnp.dot(x_ref[...], wx_ref[...], preferred_element_type=jnp.float32)
    if has_features:
        kq = kq + jnp.dot(f_ref[...], wf_ref[...],
                          preferred_element_type=jnp.float32)
    kq = kq + b_ref[...]                                     # (TB*N, 2d) f32

    K = kq[:, :d]
    Q = kq[:, d:2 * d]
    if qk_bf16:
        # Single-pass bf16 MXU for K.Q^T; accumulation stays f32.
        K = K.astype(jnp.bfloat16)
        Q = Q.astype(jnp.bfloat16)
    K = K.reshape(tb, n, d)
    Q = Q.reshape(tb, n, d)

    # Batched K Q^T: contract last axes, batch axis 0 (no Q.T relayout).
    W = lax.dot_general(
        K, Q,
        dimension_numbers=(((2,), (2,)), ((0,), (0,))),
        preferred_element_type=jnp.float32)                  # (TB, N, N)

    # Zero the diagonal once; score is the row-sum of the same masked matrix.
    rows = lax.broadcasted_iota(jnp.int32, (n, n), 0)
    cols = lax.broadcasted_iota(jnp.int32, (n, n), 1)
    Wm = jnp.where((rows == cols)[None, :, :], 0.0, W)       # (TB, N, N)

    attn_ref[...] = Wm
    score_ref[...] = jnp.sum(Wm, axis=-1, keepdims=True)     # (TB, N, 1)


# ----------------------------------------------------------------------------
# Call-once parameter preparation (hoisted out of the per-forward path).
# ----------------------------------------------------------------------------
def prepare_sva_params(wk, bk, wq, bq, *, n_bert=768, dtype=jnp.float32):
    """wk/wq: (d, D) PyTorch Linear layout; bk/bq: (d,); D = n_bert + F.
    Returns (w_x (n_bert, 2d), w_f (F, 2d) or None, b (1, 2d))."""
    d, D = wk.shape
    w_kq = jnp.concatenate([wk.T, wq.T], axis=1).astype(dtype)        # (D, 2d)
    b_kq = jnp.concatenate([bk, bq], axis=0).reshape(1, 2 * d).astype(jnp.float32)
    w_x = w_kq[:n_bert]
    w_f = w_kq[n_bert:] if D > n_bert else None
    return w_x, w_f, b_kq


def _auto_batch_tile(B, N, Hb, F, x_bytes):
    """Largest batch tile that keeps double-buffered streams well under the
    v5e 16 MiB scoped-VMEM default; for big workloads leave >= 2 grid steps
    so the 'parallel' batch axis can shard over v7x's two TensorCores."""
    per_batch = N * Hb * x_bytes + N * F * 4 + N * N * 4 + N * 4
    budget = 6 * 1024 * 1024                     # x2 for double-buffering
    max_tb = max(1, budget // (2 * per_batch))
    if B >= 2 and B * per_batch >= (2 << 20):    # work is non-trivial per core
        max_tb = min(max_tb, max(1, B // 2))
    tb = 1
    for t in range(1, B + 1):
        if B % t == 0 and t <= max_tb:
            tb = t
    return tb


# ----------------------------------------------------------------------------
# Wrapper
# ----------------------------------------------------------------------------
def self_voting_attention(x_event, features, params, *, batch_tile=None,
                          qk_bf16=True):
    """x_event: (B, N, 768) (BERT event reps, f32 or bf16 from the producer);
    features: (B, N, F) f32 or None; params from prepare_sva_params().
    Returns (score (B, N) f32, attn (B, N, N) f32) — matches PyTorch forward.
    """
    w_x, w_f, b_kq = params
    B, N, Hb = x_event.shape
    two_d = w_x.shape[1]
    d = two_d // 2
    has_features = features is not None
    F = features.shape[2] if has_features else 0
    if has_features:
        assert w_f is not None and w_f.shape[0] == F, "feature width mismatch"

    # Free (metadata-only) reshapes in HBM -> clean 2-D (8,128)-tiled blocks.
    x2 = x_event.reshape(B * N, Hb)
    f2 = features.astype(jnp.float32).reshape(B * N, F) if has_features else None

    x_bytes = x_event.dtype.itemsize
    TB = (_auto_batch_tile(B, N, Hb, F, x_bytes)
          if batch_tile is None else batch_tile)
    assert B % TB == 0, "batch_tile must divide B"
    grid = (B // TB,)

    # --- specs ---------------------------------------------------------------
    in_specs = [pl.BlockSpec((TB * N, Hb), lambda b: (b, 0))]          # x slab
    inputs = [x2]
    if has_features:
        in_specs.append(pl.BlockSpec((TB * N, F), lambda b: (b, 0)))   # feats
        inputs.append(f2)
    in_specs.append(pl.BlockSpec((Hb, two_d), lambda b: (0, 0)))       # Wkq[:768]
    inputs.append(w_x)
    if has_features:
        in_specs.append(pl.BlockSpec((F, two_d), lambda b: (0, 0)))    # Wkq[768:]
        inputs.append(w_f)
    in_specs.append(pl.BlockSpec((1, two_d), lambda b: (0, 0)))        # [bk|bq]
    inputs.append(b_kq)

    out_specs = [
        pl.BlockSpec((TB, N, 1), lambda b: (b, 0, 0)),                 # score
        pl.BlockSpec((TB, N, N), lambda b: (b, 0, 0)),                 # attn
    ]

    # --- advisory cost hint for XLA's scheduler ------------------------------
    flops = (2 * B * N * Hb * two_d
             + (2 * B * N * F * two_d if has_features else 0)
             + 2 * B * N * N * d)
    bytes_accessed = (B * N * Hb * x_bytes
                      + (B * N * F * 4 if has_features else 0)
                      + Hb * two_d * w_x.dtype.itemsize
                      + (F * two_d * w_f.dtype.itemsize if has_features else 0)
                      + two_d * 4
                      + B * N * 4
                      + B * N * N * 4)
    cost = pl.CostEstimate(flops=int(flops), transcendentals=0,
                           bytes_accessed=int(bytes_accessed))

    # --- VMEM guard: only raise the scoped limit if the tile needs it --------
    tile_bytes = (2 * TB * N * (Hb * x_bytes + F * 4 + N * 4 + 4)
                  + 2 * (Hb + F + 1) * two_d * 4)
    cp_kwargs = dict(dimension_semantics=("parallel",))
    if tile_bytes > 12 * 1024 * 1024:
        cp_kwargs["vmem_limit_bytes"] = int(tile_bytes * 3 // 2)
    compiler_params = pltpu.CompilerParams(**cp_kwargs)

    score3, attn = pl.pallas_call(
        functools.partial(_sva_kernel, d=d, n=N,
                          has_features=has_features, qk_bf16=qk_bf16),
        out_shape=(
            jax.ShapeDtypeStruct((B, N, 1), jnp.float32),
            jax.ShapeDtypeStruct((B, N, N), jnp.float32),
        ),
        grid_spec=pltpu.PrefetchScalarGridSpec(
            num_scalar_prefetch=0,
            grid=grid,
            in_specs=in_specs,
            out_specs=out_specs,
        ),
        compiler_params=compiler_params,
        cost_estimate=cost,
    )(*inputs)

    return score3.reshape(B, N), attn        # squeeze is a free bitcast reshape


# ----------------------------------------------------------------------------
# Glue: prep_features (pure column select + concat on a tiny (B,N,10) tensor)
# ----------------------------------------------------------------------------
def prep_features(config, feats):
    feat = feats[:, :, 0:10].astype(jnp.float32)
    cols = []
    if config.sl:
        cols.append(feat[:, :, 0:1])
    if config.unem:
        cols.append(feat[:, :, 1:2])
    if config.nem:
        cols.append(feat[:, :, 7:8])
    if config.af:
        cols.append(feat[:, :, 2:3])
    if config.an:
        cols.append(feat[:, :, 4:5])
    if config.ps:
        cols.append(feat[:, :, 5:6])
    if config.corref:
        cols.append(feat[:, :, 6:7])
    if not cols:
        return None
    return jnp.concatenate(cols, axis=2)


def xavier_uniform(key, fan_out, fan_in):
    # matches nn.init.xavier_uniform_ on a (fan_out, fan_in) weight
    bound = math.sqrt(6.0 / (fan_in + fan_out))
    return jax.random.uniform(key, (fan_out, fan_in), jnp.float32, -bound, bound)


# ----------------------------------------------------------------------------
# Reference (pure JAX) for correctness check
# ----------------------------------------------------------------------------
def reference_forward(x, wk, bk, wq, bq):
    K = jnp.einsum("bnd,kd->bnk", x, wk) + bk
    Q = jnp.einsum("bnd,kd->bnk", x, wq) + bq
    W = jnp.einsum("bnk,bmk->bnm", K, Q)
    N = K.shape[1]
    eye = jnp.eye(N, dtype=W.dtype)[None]
    W = W * (1.0 - eye)
    return jnp.sum(W, axis=2), W


if __name__ == "__main__":
    # -------- config (frame=False -> proj input dim = 768 + back_emb) --------
    config = SimpleNamespace(
        p_key_query_dim=32,
        frame=False,
        sl=True, unem=True, nem=False, af=True, an=True,
        ps=True, corref=True, ch=False,
    )
    back_emb = 0
    if config.sl: back_emb += 1
    if config.unem or config.nem: back_emb += 1
    if config.af: back_emb += 1
    if config.an: back_emb += 1
    if config.ps: back_emb += 1
    if config.corref: back_emb += 1
    if config.ch: back_emb += 1

    B, N, H = 2, 8, 768
    D_in = H + back_emb            # 774
    d = config.p_key_query_dim     # 32

    key = jax.random.PRNGKey(0)
    k_x, k_feats, k_wk, k_wq = jax.random.split(key, 4)

    # TODO(synk): EventRepModule (BERT encoder + event gathering) is not
    # reimplemented; its per-event 768-dim output is synthesized here.
    x_event = jax.random.normal(k_x, (B, N, H), jnp.float32)
    feats = jax.random.normal(k_feats, (B, N, 10), jnp.float32)

    # Parameters: xavier_uniform_ weights, zero biases (as in initialize()).
    wk = xavier_uniform(k_wk, d, D_in)     # (d, D_in) PyTorch layout
    wq = xavier_uniform(k_wq, d, D_in)
    bk = jnp.zeros((d,), jnp.float32)
    bq = jnp.zeros((d,), jnp.float32)

    # Hoisted, call-once weight prep (fused + split at the 768 boundary).
    params = prepare_sva_params(wk, bk, wq, bq, n_bert=H)

    # forward: backup-feature columns stay a separate tiny input — no HBM
    # concat/pad/cast of the 768-wide activations.
    features = prep_features(config, feats)

    # Pure-JAX reference (uses the mathematically equivalent concatenated x).
    x_full = x_event if features is None else jnp.concatenate((x_event, features), axis=2)
    assert x_full.shape == (B, N, D_in)
    score_exp, attn_exp = reference_forward(x_full, wk, bk, wq, bq)

    # Exact-precision path (f32 K.Q^T) — tight tolerance vs. reference.
    score32, attn32 = self_voting_attention(x_event, features, params,
                                            qk_bf16=False)
    score32 = jax.block_until_ready(score32)
    attn32 = jax.block_until_ready(attn32)
    assert score32.shape == (B, N) and attn32.shape == (B, N, N)
    assert jnp.allclose(score32, score_exp, atol=1e-3, rtol=1e-3)
    assert jnp.allclose(attn32, attn_exp, atol=1e-3, rtol=1e-3)

    # Default path: bf16 K/Q operands for K.Q^T (f32 accumulation).
    score, attn = self_voting_attention(x_event, features, params)
    score = jax.block_until_ready(score)
    attn = jax.block_until_ready(attn)
    assert jnp.allclose(score, score_exp, atol=0.5, rtol=0.05)
    assert jnp.allclose(attn, attn_exp, atol=0.5, rtol=0.05)

    print("KERNEL_OK")
</pallas_src>

<mosaic_0001>
module attributes {stable_mosaic.version = 11 : i64} {
  func.func @_sva_kernel(%arg0: i32, %arg1: memref<16x768xf32, #tpu.memory_space<vmem>>, %arg2: memref<16x6xf32, #tpu.memory_space<vmem>>, %arg3: memref<768x64xf32, #tpu.memory_space<vmem>>, %arg4: memref<6x64xf32, #tpu.memory_space<vmem>>, %arg5: memref<1x64xf32, #tpu.memory_space<vmem>>, %arg6: memref<2x8x1xf32, #tpu.memory_space<vmem>>, %arg7: memref<2x8x8xf32, #tpu.memory_space<vmem>>) attributes {dimension_semantics = [#tpu.dimension_semantics<parallel>], iteration_bounds = array<i64: 1>, scalar_prefetch = 0 : i64, scratch_operands = 0 : i64, tpu.core_type = #tpu.core_type<tc>, window_params = [{transform_indices = @transform_0, window_bounds = array<i64: 16, 768>}, {transform_indices = @transform_1, window_bounds = array<i64: 16, 6>}, {pipeline_mode = #tpu.pipeline_mode<synchronous>, transform_indices = @transform_2, window_bounds = array<i64: 768, 64>}, {pipeline_mode = #tpu.pipeline_mode<synchronous>, transform_indices = @transform_3, window_bounds = array<i64: 6, 64>}, {pipeline_mode = #tpu.pipeline_mode<synchronous>, transform_indices = @transform_4, window_bounds = array<i64: 1, 64>}, {transform_indices = @transform_5, window_bounds = array<i64: 2, 8, 1>}, {transform_indices = @transform_6, window_bounds = array<i64: 2, 8, 8>}]} {
    %c0 = arith.constant 0 : index
    %c0_0 = arith.constant 0 : index
    %0 = vector.load %arg1[%c0, %c0_0] : memref<16x768xf32, #tpu.memory_space<vmem>>, vector<16x768xf32>
    %c0_1 = arith.constant 0 : index
    %c0_2 = arith.constant 0 : index
    %1 = vector.load %arg3[%c0_1, %c0_2] : memref<768x64xf32, #tpu.memory_space<vmem>>, vector<768x64xf32>
    %cst = arith.constant dense<0.000000e+00> : vector<16x64xf32>
    %2 = tpu.matmul %0, %1, %cst {dimension_numbers = #tpu.dot_dimension_numbers<[1], [0], [0], [1], [0, 0, 1, 1], [], []>} : vector<16x768xf32>, vector<768x64xf32>, vector<16x64xf32> -> vector<16x64xf32>
    %c0_3 = arith.constant 0 : index
    %c0_4 = arith.constant 0 : index
    %3 = vector.load %arg2[%c0_3, %c0_4] : memref<16x6xf32, #tpu.memory_space<vmem>>, vector<16x6xf32>
    %c0_5 = arith.constant 0 : index
    %c0_6 = arith.constant 0 : index
    %4 = vector.load %arg4[%c0_5, %c0_6] : memref<6x64xf32, #tpu.memory_space<vmem>>, vector<6x64xf32>
    %cst_7 = arith.constant dense<0.000000e+00> : vector<16x64xf32>
    %5 = tpu.matmul %3, %4, %cst_7 {dimension_numbers = #tpu.dot_dimension_numbers<[1], [0], [0], [1], [0, 0, 1, 1], [], []>} : vector<16x6xf32>, vector<6x64xf32>, vector<16x64xf32> -> vector<16x64xf32>
    %6 = arith.addf %2, %5 : vector<16x64xf32>
    %c0_8 = arith.constant 0 : index
    %c0_9 = arith.constant 0 : index
    %7 = vector.load %arg5[%c0_8, %c0_9] : memref<1x64xf32, #tpu.memory_space<vmem>>, vector<1x64xf32>
    %8 = vector.broadcast %7 : vector<1x64xf32> to vector<16x64xf32>
    %9 = arith.addf %6, %8 : vector<16x64xf32>
    %10 = vector.extract_strided_slice %9 {offsets = [0, 0], sizes = [16, 32], strides = [1, 1]} : vector<16x64xf32> to vector<16x32xf32>
    %11 = vector.extract_strided_slice %9 {offsets = [0, 32], sizes = [16, 32], strides = [1, 1]} : vector<16x64xf32> to vector<16x32xf32>
    %12 = vector.shape_cast %10 : vector<16x32xf32> to vector<2x8x32xf32>
    %13 = vector.shape_cast %11 : vector<16x32xf32> to vector<2x8x32xf32>
    %cst_10 = arith.constant dense<0.000000e+00> : vector<2x8x8xf32>
    %14 = tpu.matmul %12, %13, %cst_10 {dimension_numbers = #tpu.dot_dimension_numbers<[2], [2], [1], [1], [0, 0, 0, 1, 1, 1], [0], [0]>} : vector<2x8x32xf32>, vector<2x8x32xf32>, vector<2x8x8xf32> -> vector<2x8x8xf32>
    %15 = tpu.iota {dimensions = array<i32: 0>} : vector<8x8xi32>
    %16 = tpu.iota {dimensions = array<i32: 1>} : vector<8x8xi32>
    %17 = arith.cmpi eq, %15, %16 : vector<8x8xi32>
    %18 = vector.shape_cast %17 : vector<8x8xi1> to vector<1x8x8xi1>
    %cst_11 = arith.constant 0.000000e+00 : f32
    %19 = vector.shape_cast %18 : vector<1x8x8xi1> to vector<1x8x8xi1>
    %20 = vector.broadcast %19 : vector<1x8x8xi1> to vector<2x8x8xi1>
    %21 = vector.broadcast %cst_11 : f32 to vector<2x8x8xf32>
    %22 = arith.select %20, %21, %14 : vector<2x8x8xi1>, vector<2x8x8xf32>
    %c0_12 = arith.constant 0 : index
    %c0_13 = arith.constant 0 : index
    %c0_14 = arith.constant 0 : index
    %23 = vector.load %arg7[%c0_12, %c0_13, %c0_14] : memref<2x8x8xf32, #tpu.memory_space<vmem>>, vector<2x8x8xf32>
    tpu.vector_store %arg7[%c0_12, %c0_13, %c0_14], %22 {strides = array<i32>} : memref<2x8x8xf32, #tpu.memory_space<vmem>>, vector<2x8x8xf32>,
    %cst_15 = arith.constant dense<0.000000e+00> : vector<2x8xf32>
    %24 = vector.multi_reduction <add>, %22, %cst_15 [2] : vector<2x8x8xf32> to vector<2x8xf32>
    %25 = vector.shape_cast %24 : vector<2x8xf32> to vector<2x8x1xf32>
    %c0_16 = arith.constant 0 : index
    %c0_17 = arith.constant 0 : index
    %c0_18 = arith.constant 0 : index
    %26 = vector.load %arg6[%c0_16, %c0_17, %c0_18] : memref<2x8x1xf32, #tpu.memory_space<vmem>>, vector<2x8x1xf32>
    tpu.vector_store %arg6[%c0_16, %c0_17, %c0_18], %25 {strides = array<i32>} : memref<2x8x1xf32, #tpu.memory_space<vmem>>, vector<2x8x1xf32>,
    return
  }
  func.func @transform_0(%arg0: i32) -> (i32, i32) {
    %c0_i32 = arith.constant 0 : i32
    %c0_i32_0 = arith.constant 0 : i32
    return %arg0, %c0_i32 : i32, i32
  }
  func.func @transform_1(%arg0: i32) -> (i32, i32) {
    %c0_i32 = arith.constant 0 : i32
    %c0_i32_0 = arith.constant 0 : i32
    return %arg0, %c0_i32 : i32, i32
  }
  func.func @transform_2(%arg0: i32) -> (i32, i32) {
    %c0_i32 = arith.constant 0 : i32
    %c0_i32_0 = arith.constant 0 : i32
    %c0_i32_1 = arith.constant 0 : i32
    return %c0_i32, %c0_i32_0 : i32, i32
  }
  func.func @transform_3(%arg0: i32) -> (i32, i32) {
    %c0_i32 = arith.constant 0 : i32
    %c0_i32_0 = arith.constant 0 : i32
    %c0_i32_1 = arith.constant 0 : i32
    return %c0_i32, %c0_i32_0 : i32, i32
  }
  func.func @transform_4(%arg0: i32) -> (i32, i32) {
    %c0_i32 = arith.constant 0 : i32
    %c0_i32_0 = arith.constant 0 : i32
    %c0_i32_1 = arith.constant 0 : i32
    return %c0_i32, %c0_i32_0 : i32, i32
  }
  func.func @transform_5(%arg0: i32) -> (i32, i32, i32) {
    %c0_i32 = arith.constant 0 : i32
    %c0_i32_0 = arith.constant 0 : i32
    %c0_i32_1 = arith.constant 0 : i32
    return %arg0, %c0_i32, %c0_i32_0 : i32, i32, i32
  }
  func.func @transform_6(%arg0: i32) -> (i32, i32, i32) {
    %c0_i32 = arith.constant 0 : i32
    %c0_i32_0 = arith.constant 0 : i32
    %c0_i32_1 = arith.constant 0 : i32
    return %arg0, %c0_i32, %c0_i32_0 : i32, i32, i32
  }
}

</mosaic_0001>

<bundles_post_ra>
// kernel: tpu_custom_call.1
= control target key start
LH: loop header
LB: loop body
LE: loop exit
PB: predicated region body
PF: predicated region fallthrough
CT: control target
= control target key end

     0   :  { %vm141_vm0 = vcmask 1045504   ;;  %vm134_vm1 = vcmask 48128   ;;  %s1317_s0 = inlined_call_operand.vmem [shape: f32[16,768], index: 0, kind: input, shape index: {}]   ;;  %s1318_s1 = inlined_call_operand.vmem [shape: f32[16,6], index: 1, kind: input, shape index: {}]   ;;  %s1319_s2 = inlined_call_operand.vmem [shape: f32[768,64], index: 2, kind: input, shape index: {}]   ;;  %s1320_s3 = inlined_call_operand.vmem [shape: f32[6,64], index: 3, kind: input, shape index: {}]   ;;  %s1321_s4 = inlined_call_operand.vmem [shape: f32[1,64], index: 4, kind: input, shape index: {}]   ;;  %s1322_s5 = inlined_call_operand.vmem [shape: f32[2,8,1], index: 5, kind: output, shape index: {0}]   ;;  %s1323_s6 = inlined_call_operand.hbm [shape: f32[2,8,8], index: 6, kind: output, shape index: {1}]  }
   0x1   :  { %v133_v0 = vld [vmem:[%s1320_s3] sm:$0x3f]  ;;  %v52_v2 = vld [vmem:[%s1319_s2 + $0x88] sm:$0xff]  ;;  %v53_v14 = vld [vmem:[%s1319_s2 + $0x90] sm:$0xff] }
   0x2   :  { %v51_v1 = vld [vmem:[%s1319_s2 + $0x80] sm:$0xff]  ;;  %779 = vmatprep.subr.msk.mxu0 %vm141_vm0, %v133_v0  ;;  %v36_v5 = vld [vmem:[%s1319_s2 + $0x8] sm:$0xff]  ;;  %v54_v16 = vld [vmem:[%s1319_s2 + $0x98] sm:$0xff] }
   0x3   :  { %v794_v3 = vpack.c.bf16 %v52_v2, %v51_v1  ;;  %v35_v4 = vld [vmem:[%s1319_s2] sm:$0xff]  ;;  %780 = vmatpush3.msk.msra.mxu0 %vm141_vm0, %v133_v0  ;;  %v84_v9 = vld [vmem:[%s1319_s2 + $0x188] sm:$0xff]  ;;  %v37_v17 = vld [vmem:[%s1319_s2 + $0x10] sm:$0xff]  ;;  %v798_v19 = vpack.c.bf16 %v54_v16, %v53_v14 }
   0x4   :  { %v131_v6 = vld [vmem:[%s1318_s1] sm:$0xff]  ;;  %v796_v7 = vpack.c.bf16 %v36_v5, %v35_v4  ;;  %v132_v10 = vld [vmem:[%s1318_s1 + $0x8] sm:$0xff]  ;;  %v38_v18 = vld [vmem:[%s1319_s2 + $0x18] sm:$0xff] }
   0x5   :  { %781 = vmatprep.mubr.msk.f32.mxu0 %vm134_vm1, %v131_v6  ;;  %v83_v8 = vld [vmem:[%s1319_s2 + $0x180] sm:$0xff]  ;;  %795 = vmatprep.subr.bf16.mxu1 %v794_v3  ;;  %v68_v13 = vld [vmem:[%s1319_s2 + $0x108] sm:$0xff]  ;;  %v800_v20 = vpack.c.bf16 %v38_v18, %v37_v17  ;;  %v85_v21 = vld [vmem:[%s1319_s2 + $0x190] sm:$0xff] }
   0x6   :  { %v826_v11 = vpack.c.bf16 %v84_v9, %v83_v8  ;;  %782 = vmatmul.mubr.msk.f32.vlgmr.msra.gmra.mrb[0].mxu0 %vm134_vm1, %v132_v10  ;;  %v67_v12 = vld [vmem:[%s1319_s2 + $0x100] sm:$0xff]  ;;  %797 = vmatpush3.bf16.msra.mxu1 %v796_v7  ;;  %v86_v22 = vld [vmem:[%s1319_s2 + $0x198] sm:$0xff]  ;;  %v69_v23 = vld [vmem:[%s1319_s2 + $0x110] sm:$0xff] }
   0x7   :  { %v828_v15 = vpack.c.bf16 %v68_v13, %v67_v12  ;;  %v830_v24 = vpack.c.bf16 %v86_v22, %v85_v21  ;;  %v70_v25 = vld [vmem:[%s1319_s2 + $0x118] sm:$0xff]  ;;  %v55_v26 = vld [vmem:[%s1319_s2 + $0xa0] sm:$0xff]  ;;  %v56_v27 = vld [vmem:[%s1319_s2 + $0xa8] sm:$0xff]  ;;  %799 = vmatprep.subr.bf16.mxu1 %v798_v19 }
   0x8   :  { %827 = vmatprep.subr.bf16.mxu0 %v826_v11  ;;  %v832_v28 = vpack.c.bf16 %v70_v25, %v69_v23  ;;  %v802_v29 = vpack.c.bf16 %v56_v27, %v55_v26  ;;  %v39_v30 = vld [vmem:[%s1319_s2 + $0x20] sm:$0xff]  ;;  %v40_v31 = vld [vmem:[%s1319_s2 + $0x28] sm:$0xff]  ;;  %v57_v38 = vld [vmem:[%s1319_s2 + $0xb0] sm:$0xff] }
   0x9   :  { %829 = vmatpush3.bf16.msra.mxu0 %v828_v15  ;;  %v87_v32 = vld [vmem:[%s1319_s2 + $0x1a0] sm:$0xff]  ;;  %v804_v33 = vpack.c.bf16 %v40_v31, %v39_v30  ;;  %v88_v34 = vld [vmem:[%s1319_s2 + $0x1a8] sm:$0xff]  ;;  %v58_v39 = vld [vmem:[%s1319_s2 + $0xb8] sm:$0xff] }
   0xa   :  { %801 = vmatpush3.bf16.msra.mxu1 %v800_v20  ;;  %831 = vmatprep.subr.bf16.mxu0 %v830_v24  ;;  %v71_v35 = vld [vmem:[%s1319_s2 + $0x120] sm:$0xff]  ;;  %v72_v36 = vld [vmem:[%s1319_s2 + $0x128] sm:$0xff]  ;;  %v834_v37 = vpack.c.bf16 %v88_v34, %v87_v32  ;;  %v41_v40 = vld [vmem:[%s1319_s2 + $0x30] sm:$0xff]  ;;  %v806_v42 = vpack.c.bf16 %v58_v39, %v57_v38 }
   0xb   :  { %803 = vmatprep.subr.bf16.mxu1 %v802_v29  ;;  %v836_v41 = vpack.c.bf16 %v72_v36, %v71_v35  ;;  %v42_v43 = vld [vmem:[%s1319_s2 + $0x38] sm:$0xff]  ;;  %v89_v44 = vld [vmem:[%s1319_s2 + $0x1b0] sm:$0xff]  ;;  %v59_v49 = vld [vmem:[%s1319_s2 + $0xc0] sm:$0xff] }
   0xc   :  { %v90_v45 = vld [vmem:[%s1319_s2 + $0x1b8] sm:$0xff]  ;;  %v73_v47 = vld [vmem:[%s1319_s2 + $0x130] sm:$0xff]  ;;  %v808_v50 = vpack.c.bf16 %v42_v43, %v41_v40  ;;  %v60_v51 = vld [vmem:[%s1319_s2 + $0xc8] sm:$0xff] }
   0xd   :  { %833 = vmatpush3.bf16.msra.mxu0 %v832_v28  ;;  %v838_v46 = vpack.c.bf16 %v90_v45, %v89_v44  ;;  %v74_v48 = vld [vmem:[%s1319_s2 + $0x138] sm:$0xff]  ;;  %v43_v52 = vld [vmem:[%s1319_s2 + $0x40] sm:$0xff]  ;;  %v810_v53 = vpack.c.bf16 %v60_v51, %v59_v49  ;;  %v44_v54 = vld [vmem:[%s1319_s2 + $0x48] sm:$0xff] }
   0xe   :  { %835 = vmatprep.subr.bf16.mxu0 %v834_v37  ;;  %805 = vmatpush3.bf16.msra.mxu1 %v804_v33  ;;  %v91_v55 = vld [vmem:[%s1319_s2 + $0x1c0] sm:$0xff]  ;;  %v92_v56 = vld [vmem:[%s1319_s2 + $0x1c8] sm:$0xff]  ;;  %v840_v57 = vpack.c.bf16 %v74_v48, %v73_v47  ;;  %v61_v58 = vld [vmem:[%s1319_s2 + $0xd0] sm:$0xff]  ;;  %v812_v63 = vpack.c.bf16 %v44_v54, %v43_v52 }
   0xf   :  { %807 = vmatprep.subr.bf16.mxu1 %v806_v42  ;;  %v62_v59 = vld [vmem:[%s1319_s2 + $0xd8] sm:$0xff]  ;;  %v842_v60 = vpack.c.bf16 %v92_v56, %v91_v55  ;;  %v75_v61 = vld [vmem:[%s1319_s2 + $0x140] sm:$0xff]  ;;  %v76_v62 = vld [vmem:[%s1319_s2 + $0x148] sm:$0xff] }
  0x10   :  { %v93_v0 = vld [vmem:[%s1319_s2 + $0x1d0] sm:$0xff]  ;;  %v94_v1 = vld [vmem:[%s1319_s2 + $0x1d8] sm:$0xff]  ;;  %v814_v2 = vpack.c.bf16 %v62_v59, %v61_v58  ;;  %v844_v5 = vpack.c.bf16 %v76_v62, %v75_v61  ;;  %v63_v6 = vld [vmem:[%s1319_s2 + $0xe0] sm:$0xff] }
  0x11   :  { %837 = vmatpush3.bf16.msra.mxu0 %v836_v41  ;;  %v45_v3 = vld [vmem:[%s1319_s2 + $0x50] sm:$0xff]  ;;  %v46_v4 = vld [vmem:[%s1319_s2 + $0x58] sm:$0xff]  ;;  %v64_v7 = vld [vmem:[%s1319_s2 + $0xe8] sm:$0xff]  ;;  %v846_v8 = vpack.c.bf16 %v94_v1, %v93_v0 }
  0x12   :  { %839 = vmatprep.subr.bf16.mxu0 %v838_v46  ;;  %809 = vmatpush3.bf16.msra.mxu1 %v808_v50  ;;  %v77_v9 = vld [vmem:[%s1319_s2 + $0x150] sm:$0xff]  ;;  %v78_v10 = vld [vmem:[%s1319_s2 + $0x158] sm:$0xff]  ;;  %v816_v11 = vpack.c.bf16 %v46_v4, %v45_v3  ;;  %v95_v12 = vld [vmem:[%s1319_s2 + $0x1e0] sm:$0xff]  ;;  %v818_v14 = vpack.c.bf16 %v64_v7, %v63_v6 }
  0x13   :  { %811 = vmatprep.subr.bf16.mxu1 %v810_v53  ;;  %v96_v13 = vld [vmem:[%s1319_s2 + $0x1e8] sm:$0xff]  ;;  %v47_v15 = vld [vmem:[%s1319_s2 + $0x60] sm:$0xff]  ;;  %v848_v18 = vpack.c.bf16 %v78_v10, %v77_v9  ;;  %v65_v19 = vld [vmem:[%s1319_s2 + $0xf0] sm:$0xff] }
  0x14   :  { %v48_v16 = vld [vmem:[%s1319_s2 + $0x68] sm:$0xff]  ;;  %v66_v20 = vld [vmem:[%s1319_s2 + $0xf8] sm:$0xff]  ;;  %v850_v21 = vpack.c.bf16 %v96_v13, %v95_v12  ;;  %v79_v22 = vld [vmem:[%s1319_s2 + $0x160] sm:$0xff] }
  0x15   :  { %841 = vmatpush3.bf16.msra.mxu0 %v840_v57  ;;  %v24_v17 = vld [vmem:[%s1317_s0 + $0x8] sm:$0xff]  ;;  %v26_v24 = vld [vmem:[%s1317_s0 + $0x18] sm:$0xff]  ;;  %v820_v25 = vpack.c.bf16 %v48_v16, %v47_v15  ;;  %v97_v26 = vld [vmem:[%s1319_s2 + $0x1f0] sm:$0xff]  ;;  %v822_v28 = vpack.c.bf16 %v66_v20, %v65_v19 }
  0x16   :  { %843 = vmatprep.subr.bf16.mxu0 %v842_v60  ;;  %813 = vmatpush3.bf16.msra.mxu1 %v812_v63  ;;  %v80_v23 = vld [vmem:[%s1319_s2 + $0x168] sm:$0xff]  ;;  %v98_v27 = vld [vmem:[%s1319_s2 + $0x1f8] sm:$0xff]  ;;  %v49_v29 = vld [vmem:[%s1319_s2 + $0x70] sm:$0xff] }
  0x17   :  { %815 = vmatprep.subr.bf16.mxu1 %v814_v2  ;;  %284 = vmatprep.mubr.f32.mxu1 %v24_v17  ;;  %v50_v30 = vld [vmem:[%s1319_s2 + $0x78] sm:$0xff]  ;;  %v852_v31 = vpack.c.bf16 %v80_v23, %v79_v22  ;;  %v115_v32 = vld [vmem:[%s1319_s2 + $0x280] sm:$0xff]  ;;  %v116_v33 = vld [vmem:[%s1319_s2 + $0x288] sm:$0xff]  ;;  %v854_v34 = vpack.c.bf16 %v98_v27, %v97_v26 }
  0x18   :  { %359 = vmatprep.mubr.f32.mxu0 %v26_v24  ;;  %v81_v35 = vld [vmem:[%s1319_s2 + $0x170] sm:$0xff]  ;;  %v82_v36 = vld [vmem:[%s1319_s2 + $0x178] sm:$0xff]  ;;  %v824_v37 = vpack.c.bf16 %v50_v30, %v49_v29  ;;  %v858_v38 = vpack.c.bf16 %v116_v33, %v115_v32  ;;  %v99_v39 = vld [vmem:[%s1319_s2 + $0x200] sm:$0xff] }
  0x19   :  { %845 = vmatpush3.bf16.msra.mxu0 %v844_v5  ;;  %v100_v40 = vld [vmem:[%s1319_s2 + $0x208] sm:$0xff]  ;;  %v856_v41 = vpack.c.bf16 %v82_v36, %v81_v35  ;;  %v117_v42 = vld [vmem:[%s1319_s2 + $0x290] sm:$0xff]  ;;  %v118_v43 = vld [vmem:[%s1319_s2 + $0x298] sm:$0xff] }
  0x1a   :  { %847 = vmatprep.subr.bf16.mxu0 %v846_v8  ;;  %817 = vmatpush3.bf16.msra.mxu1 %v816_v11  ;;  %v23_v44 = vld [vmem:[%s1317_s0] sm:$0xff]  ;;  %v860_v45 = vpack.c.bf16 %v100_v40, %v99_v39  ;;  %v30_v46 = vld [vmem:[%s1317_s0 + $0x38] sm:$0xff]  ;;  %v862_v47 = vpack.c.bf16 %v118_v43, %v117_v42  ;;  %v101_v48 = vld [vmem:[%s1319_s2 + $0x210] sm:$0xff] }
  0x1b   :  { %819 = vmatprep.subr.bf16.mxu1 %v818_v14  ;;  %v102_v49 = vld [vmem:[%s1319_s2 + $0x218] sm:$0xff]  ;;  %v25_v50 = vld [vmem:[%s1317_s0 + $0x10] sm:$0xff]  ;;  %v119_v51 = vld [vmem:[%s1319_s2 + $0x2a0] sm:$0xff] }
  0x1c   :  { %v120_v52 = vld [vmem:[%s1319_s2 + $0x2a8] sm:$0xff]  ;;  %v29_v54 = vld [vmem:[%s1317_s0 + $0x30] sm:$0xff]  ;;  %v864_v55 = vpack.c.bf16 %v102_v49, %v101_v48  ;;  %v103_v56 = vld [vmem:[%s1319_s2 + $0x220] sm:$0xff] }
  0x1d   :  { %849 = vmatpush3.bf16.msra.mxu0 %v848_v18  ;;  %v32_v53 = vld [vmem:[%s1317_s0 + $0x48] sm:$0xff]  ;;  %v866_v57 = vpack.c.bf16 %v120_v52, %v119_v51 }
  0x1e   :  { %851 = vmatprep.subr.bf16.mxu0 %v850_v21  ;;  %821 = vmatpush3.bf16.msra.mxu1 %v820_v25  ;;  %v104_v58 = vld [vmem:[%s1319_s2 + $0x228] sm:$0xff] }
  0x1f   :  { %823 = vmatprep.subr.bf16.mxu1 %v822_v28  ;;  %v28_v59 = vld [vmem:[%s1317_s0 + $0x28] sm:$0xff] }
  0x21   :  { %853 = vmatpush3.bf16.msra.mxu0 %v852_v31 }
  0x22   :  { %855 = vmatprep.subr.bf16.mxu0 %v854_v34  ;;  %825 = vmatpush3.bf16.msra.mxu1 %v824_v37 }
  0x23   :  { %859 = vmatprep.subr.bf16.mxu1 %v858_v38 }
  0x25   :  { %857 = vmatpush3.bf16.msra.mxu0 %v856_v41  ;;  %285 = vmatmul.mubr.f32.vlgmr.msra.gmra.mrb[0].mxu1 %v23_v44 }
  0x26   :  { %861 = vmatpush3.bf16.msra.mxu1 %v860_v45  ;;  %289 = vmatprep.mubr.f32.mxu1 %v30_v46 }
  0x27   :  { %863 = vmatprep.subr.bf16.mxu1 %v862_v47 }
  0x28   :  { %360 = vmatmul.mubr.f32.vlgmr.msra.gmra.mrb[2].mxu0 %v25_v50 }
  0x29   :  { %12 = vsyncpa [#allocation3], 0  ;;  %364 = vmatprep.mubr.f32.mxu0 %v32_v53  ;;  %v31_v60 = vld [vmem:[%s1317_s0 + $0x40] sm:$0xff]  ;;  %v121_v61 = vld [vmem:[%s1319_s2 + $0x2b0] sm:$0xff]  ;;  %290 = vmatmul.mubr.f32.gmra.mrb[2].mxu1 %v29_v54  ;;  %v868_v63 = vpack.c.bf16 %v104_v58, %v103_v56  ;;  %v920_v31 = vmov 0.0   ;;  %vm921_vm2 = vmmov 0  }
  0x2a   :  { %v122_v62 = vld [vmem:[%s1319_s2 + $0x2b8] sm:$0xff]  ;;  %865 = vmatpush3.bf16.msra.mxu1 %v864_v55  ;;  %434 = vmatprep.mubr.f32.mxu1 %v28_v59  ;;  %v105_v1 = vld [vmem:[%s1319_s2 + $0x230] sm:$0xff]  ;;  %v123_v3 = vld [vmem:[%s1319_s2 + $0x2c0] sm:$0xff]  ;;  %s922_s10 = smov 96   ;;  %vm457_vm3 = vcmask 261120   ;;  %vm618_vm5 = vcmask 64512  }
  0x2b   :  { %867 = vmatprep.subr.bf16.mxu1 %v866_v57  ;;  %v870_v0 = vpack.c.bf16 %v122_v62, %v121_v61  ;;  %v106_v2 = vld [vmem:[%s1319_s2 + $0x238] sm:$0xff]  ;;  %v124_v4 = vld [vmem:[%s1319_s2 + $0x2c8] sm:$0xff]  ;;  %v107_v7 = vld [vmem:[%s1319_s2 + $0x240] sm:$0xff]  ;;  %784 = vmatprep.subr.mxu0 %v920_v31 }
  0x2c   :  { %365 = vmatmul.mubr.f32.gmra.mrb[4].mxu0 %v31_v60  ;;  %v872_v5 = vpack.c.bf16 %v106_v2, %v105_v1  ;;  %v874_v6 = vpack.c.bf16 %v124_v4, %v123_v3  ;;  %v108_v8 = vld [vmem:[%s1319_s2 + $0x248] sm:$0xff]  ;;  %v125_v9 = vld [vmem:[%s1319_s2 + $0x2d0] sm:$0xff]  ;;  %v126_v10 = vld [vmem:[%s1319_s2 + $0x2d8] sm:$0xff] }
  0x2d   :  { %v876_v11 = vpack.c.bf16 %v108_v8, %v107_v7  ;;  %v878_v12 = vpack.c.bf16 %v126_v10, %v125_v9  ;;  %v109_v13 = vld [vmem:[%s1319_s2 + $0x250] sm:$0xff]  ;;  %v110_v14 = vld [vmem:[%s1319_s2 + $0x258] sm:$0xff]  ;;  %v127_v15 = vld [vmem:[%s1319_s2 + $0x2e0] sm:$0xff]  ;;  %786 = vmatprep.mubr.msk.f32.mxu0 %vm921_vm2, %v920_v31 }
  0x2e   :  { %869 = vmatpush3.bf16.msra.mxu1 %v868_v63  ;;  %v128_v16 = vld [vmem:[%s1319_s2 + $0x2e8] sm:$0xff]  ;;  %v880_v17 = vpack.c.bf16 %v110_v14, %v109_v13  ;;  %v111_v19 = vld [vmem:[%s1319_s2 + $0x260] sm:$0xff]  ;;  %v129_v21 = vld [vmem:[%s1319_s2 + $0x2f0] sm:$0xff]  ;;  %v609_v63 = vlaneseq }
  0x2f   :  { %871 = vmatprep.subr.bf16.mxu1 %v870_v0  ;;  %v882_v18 = vpack.c.bf16 %v128_v16, %v127_v15  ;;  %v112_v20 = vld [vmem:[%s1319_s2 + $0x268] sm:$0xff]  ;;  %v130_v22 = vld [vmem:[%s1319_s2 + $0x2f8] sm:$0xff]  ;;  %v113_v25 = vld [vmem:[%s1319_s2 + $0x270] sm:$0xff] }
  0x30   :  { %v884_v23 = vpack.c.bf16 %v112_v20, %v111_v19  ;;  %v886_v24 = vpack.c.bf16 %v130_v22, %v129_v21  ;;  %v114_v26 = vld [vmem:[%s1319_s2 + $0x278] sm:$0xff]  ;;  %v27_v28 = vld [vmem:[%s1317_s0 + $0x20] sm:$0xff]  ;;  %v33_v30 = vld [vmem:[%s1317_s0 + $0x50] sm:$0xff]  ;;  %v610_v0 = vshrl.u32 %v609_v63, 7  ;;  %v612_v1 = vand.u32 127, %v609_v63 }
  0x31   :  { %v888_v27 = vpack.c.bf16 %v114_v26, %v113_v25  ;;  %v34_v29 = vld [vmem:[%s1317_s0 + $0x58] sm:$0xff]  ;;  %v653_v53 = vld [vmem:[%s1321_s4] ss:$0 sm:$0xff]  ;;  %s923_s4 = smov [#allocation2]  }
  0x32   :  { %873 = vmatpush3.bf16.msra.mxu1 %v872_v5  ;;  %vm613_vm4 = vcmp.eq.s32.totalorder %v610_v0, %v612_v1  ;;  %s637_s11 = sshll.u32 %s923_s4, 4  ;;  %s638_s11 = int_to_ptr.vmem [resolvable:$true] %s637_s11 }
  0x33   :  { %875 = vmatprep.subr.bf16.mxu1 %v874_v6  ;;  %s896_s12 = scalar_lea.vmem %s638_s11, 256  ;;  %p901_p1 = scmp.lt.s32.totalorder %s638_s11, %s638_s11 }
  0x34   :  { %p897_p0 = scmp.ne.s32.totalorder %s638_s11, %s896_s12  ;;  %p902_p2 = scmp.lt.s32.totalorder %s896_s12, %s896_s12 }
  0x36   :  { %877 = vmatpush3.bf16.msra.mxu1 %v876_v11  ;;  %p903_p3 = por %p902_p2, %p901_p1 }
  0x37   :  { %879 = vmatprep.subr.bf16.mxu1 %v878_v12 }
  0x38   :  { %p904_p4 = pnand %p903_p3, %p897_p0 }
  0x3a   :  { %881 = vmatpush3.bf16.msra.mxu1 %v880_v17 }
  0x3b   :  { %883 = vmatprep.subr.bf16.mxu1 %v882_v18 }
  0x3e   :  { %885 = vmatpush3.bf16.msra.mxu1 %v884_v23 }
  0x3f   :  { %887 = vmatprep.subr.bf16.mxu1 %v886_v24 }
  0x42   :  { %889 = vmatpush3.bf16.msra.mxu1 %v888_v27 }
  0x45   :  { %435 = vmatmul.mubr.f32.vlgmr.msra.gmra.mrb[4].mxu1 %v27_v28 }
  0x46   :  { %439 = vmatprep.mubr.f32.mxu1 %v34_v29 }
  0x49   :  { %440 = vmatmul.mubr.f32.gmra.mrb[6].mxu1 %v33_v30 }
  0xd9   :  { %v783_v32 = vpop.f32.mrb[0].mxu0 }
  0xda   :  { %v211_v33 = vpop.f32.mrb[1].mxu0 }
  0xf8   :  { %v693_v34 = vpop.f32.mrb[0].mxu1 }
  0xf9   :  { %v694_v35 = vpop.f32.mrb[1].mxu1 }
  0xfa   :  { %v695_v36 = vadd.f32 %v694_v35, %v693_v34 }
  0xfb   :  { %v731_v37 = vpop.f32.mrb[2].mxu0 }
  0xfc   :  { %v732_v38 = vpop.f32.mrb[3].mxu0  ;;  %v287_v39 = vadd.f32 %v695_v36, %v211_v33  ;;  %v696_v41 = vpop.f32.mrb[2].mxu1 }
  0xfd   :  { %v733_v40 = vadd.f32 %v732_v38, %v731_v37  ;;  %v697_v42 = vpop.f32.mrb[3].mxu1 }
  0xfe   :  { %v698_v44 = vadd.f32 %v697_v42, %v696_v41 }
  0xff   :  { %v362_v43 = vadd.f32 %v733_v40, %v287_v39  ;;  %v734_v45 = vpop.f32.mrb[4].mxu0 }
 0x100   :  { %v735_v46 = vpop.f32.mrb[5].mxu0  ;;  %v292_v47 = vadd.f32 %v783_v32, %v698_v44 }
 0x101   :  { %v736_v48 = vadd.f32 %v735_v46, %v734_v45 }
 0x103   :  { %v367_v49 = vadd.f32 %v736_v48, %v292_v47 }
 0x118   :  { %v769_v50 = vpop.f32.mrb[4].mxu1 }
 0x119   :  { %v770_v51 = vpop.f32.mrb[5].mxu1 }
 0x11a   :  { %v771_v52 = vadd.f32 %v770_v51, %v769_v50 }
 0x11c   :  { %v437_v54 = vadd.f32 %v771_v52, %v362_v43  ;;  %v772_v55 = vpop.f32.mrb[6].mxu1 }
 0x11d   :  { %v773_v56 = vpop.f32.mrb[7].mxu1 }
 0x11e   :  { %v774_v57 = vadd.f32 %v773_v56, %v772_v55  ;;  %v452_v58 = vadd.f32 %v653_v53, %v437_v54 }
 0x120   :  { %v442_v59 = vadd.f32 %v774_v57, %v367_v49  ;;  %455 = vrot.lane.b32.xlu0 %v452_v58, %s922_s10 }
 0x122   :  { %v453_v60 = vadd.f32 %v653_v53, %v442_v59 }
 0x124   :  { %533 = vrot.lane.b32.xlu0 %v453_v60, %s922_s10 }
 0x192   :  { %v456_v61 = vpop.permute.xlu0 %455 }
 0x193   :  { %785 = vmatpush3.xpose.msk.msra.mxu0 %vm457_vm3, %v456_v61 }
 0x194   :  { %789 = vmatprep.subr.mxu0 %v920_v31 }
 0x196   :  { %787 = vmatmul.mubr.msk.f32.vlgmr.msra.gmra.mrb[6].mxu0 %vm457_vm3, %v452_v58  ;;  %v534_v62 = vpop.permute.xlu0 %533 }
 0x197   :  { %790 = vmatpush3.xpose.msk.msra.mxu0 %vm457_vm3, %v534_v62  ;;  %791 = vmatprep.mubr.msk.f32.mxu0 %vm921_vm2, %v920_v31 }
 0x19a   :  { %792 = vmatmul.mubr.msk.f32.vlgmr.msra.gmra.mrb[8].mxu0 %vm457_vm3, %v453_v60 }
 0x269   :  { %v528_v2 = vpop.f32.mrb[6].mxu0 }
 0x26a   :  { %v616_v3 = vsel %vm613_vm4, 0.0, %v528_v2  ;;  %v788_v4 = vpop.f32.mrb[7].mxu0 }
 0x26b   :  { %619 = vst.msk [vmem:[#allocation2] sm:$0xff] %vm618_vm5, %v616_v3  ;;  %v621_v5 = vsel %vm618_vm5, %v616_v3, 0.0 }
 0x26c   :  { %622 = vadd.xlane.f32.xlu1 %v621_v5 }
 0x26d   :  { %v605_v6 = vpop.f32.mrb[8].mxu0 }
 0x26e   :  { %v617_v7 = vsel %vm613_vm4, 0.0, %v605_v6  ;;  %v793_v8 = vpop.f32.mrb[9].mxu0 }
 0x26f   :  { %620 = vst.msk [vmem:[#allocation2 + $0x8] sm:$0xff] %vm618_vm5, %v617_v7  ;;  %v624_v9 = vsel %vm618_vm5, %v617_v7, 0.0 }
 0x270   :  { %625 = vadd.xlane.f32.xlu1 %v624_v9 }
 0x271   :  { %907 = shalt.err (!%p904_p4)
}
 0x272   :  { %s908_s15 = scalar_lea.hbm %s1323_s6, 256 }
 0x273   :  { %p909_p5 = scmp.ne.s32.totalorder %s1323_s6, %s908_s15  ;;  %p912_p6 = scmp.lt.u32.totalorder %s908_s15, %s1323_s6 }
 0x275   :  { %p914_p7 = pnand %p912_p6, %p909_p5 }
 0x277   :  { %917 = shalt.err (!%p914_p7)
}
 0x278   :  { %s924_s20 = smov 128   ;;  %s925_s21 = smov 8   ;;  %vm627_vm6 = vcmask 7168  }
 0x279   :  { %643 = dma.vmem_to_hbm [thread:$0]  %s638_s11, 256, %s1323_s6, [#allocation3], %s924_s20, %s924_s20, %s925_s21  }
 0x2f9   :  { %v623_v10 = vpop.xlane.xlu1 %622 }
 0x2fa   :  { %628 = vst.msk [vmem:[%s1322_s5] sm:$0xff] %vm627_vm6, %v623_v10 }
 0x2fd   :  { %v626_v11 = vpop.xlane.xlu1 %625 }
 0x2fe   :  { %629 = vst.msk [vmem:[%s1322_s5 + $0x8] sm:$0xff] %vm627_vm6, %v626_v11 }
 0x2ff   :  { %918 = dma.done.wait [#allocation3], 256  }
 0x300   :  { %919 = vsyncadd [#allocation3], 4294967040 }
 0x301   :  { %649 = vsyncpa [#allocation3], 1 }

</bundles_post_ra>
